<compile_context>
chip_gen: v7x
topology: tpu7x:2x2x1
jax: 0.10.0
libtpu: 0.0.40
codegen_flags: <defaults>
</compile_context>

<pallas_src>
import jax
import jax.numpy as jnp
from jax.experimental import pallas as pl
from jax.experimental.pallas import tpu as pltpu


_NEG_BIG = -1e30  # "minus infinity" that stays finite in f32 arithmetic


def _round_up(x, m):
    return ((x + m - 1) // m) * m


def _lse_kernel(x_ref, w_ref, b_ref, lse_ref, m_sc, l_sc):
    """Pass 1: streaming (online) logsumexp over vocab tiles."""
    j = pl.program_id(1)

    @pl.when(j == 0)
    def _():
        m_sc[...] = jnp.full_like(m_sc, _NEG_BIG)
        l_sc[...] = jnp.zeros_like(l_sc)

    # (tm, d_model) @ (d_model, tn) on the MXU, f32 accumulation.
    logits = jnp.dot(x_ref[...], w_ref[...],
                     preferred_element_type=jnp.float32) + b_ref[...]

    m_prev = m_sc[...]
    m_new = jnp.maximum(m_prev, jnp.max(logits, axis=-1, keepdims=True))
    l_sc[...] = (l_sc[...] * jnp.exp(m_prev - m_new)
                 + jnp.sum(jnp.exp(logits - m_new), axis=-1, keepdims=True))
    m_sc[...] = m_new

    @pl.when(j == pl.num_programs(1) - 1)
    def _():
        lse_ref[...] = m_sc[...] + jnp.log(l_sc[...])


def _out_kernel(x_ref, w_ref, b_ref, lse_ref, o_ref):
    """Pass 2: recompute the logits tile and normalize with the precomputed lse."""
    logits = jnp.dot(x_ref[...], w_ref[...],
                     preferred_element_type=jnp.float32) + b_ref[...]
    o_ref[...] = (logits - lse_ref[...]).astype(o_ref.dtype)


def projection_layer(x, w, b, *, tm=256, tn=512,
                     compute_dtype=jnp.bfloat16, out_dtype=jnp.float32):
    """x: (batch, seq, d_model); w: (d_model, vocab); b: (vocab,).

    Returns log_softmax(x @ w + b, axis=-1) with shape (batch, seq, vocab).
    """
    batch, seq, d_model = x.shape
    vocab = w.shape[1]
    M = batch * seq

    # Tile sizes: multiples of (8, 128), clamped for small problems.
    tm = _round_up(tm, 8)
    tn = _round_up(tn, 128)
    tm_eff = min(tm, _round_up(M, 8))
    tn_eff = min(tn, _round_up(vocab, 128))
    M_pad = _round_up(M, tm_eff)
    V_pad = _round_up(vocab, tn_eff)

    x2 = x.reshape(M, d_model).astype(compute_dtype)
    w2 = w.astype(compute_dtype)
    b2 = b.astype(jnp.float32).reshape(1, vocab)

    if M_pad != M:
        x2 = jnp.pad(x2, ((0, M_pad - M), (0, 0)))
    if V_pad != vocab:
        w2 = jnp.pad(w2, ((0, 0), (0, V_pad - vocab)))
        # Padded vocab lanes must never win the max nor add to the exp-sum.
        b2 = jnp.pad(b2, ((0, 0), (0, V_pad - vocab)),
                     constant_values=_NEG_BIG)

    grid = (M_pad // tm_eff, V_pad // tn_eff)

    # Explicit scoped-VMEM budget from the tile sizes (double-buffered blocks),
    # capped so the request stays safe on v7x's 64 MiB VMEM.
    isz = jnp.dtype(compute_dtype).itemsize
    vmem_needed = 2 * (tm_eff * d_model * isz       # x tile
                       + d_model * tn_eff * isz     # w tile
                       + tn_eff * 4                 # bias tile
                       + tm_eff * tn_eff * 4        # output tile
                       + tm_eff * 4)                # lse tile
    vmem_needed += 2 * tm_eff * 4                   # m/l scratch
    vmem_limit = int(min(max(2 * vmem_needed, 4 * 1024 * 1024),
                         64 * 1024 * 1024))

    x_spec = pl.BlockSpec((tm_eff, d_model), lambda i, j: (i, 0))
    w_spec = pl.BlockSpec((d_model, tn_eff), lambda i, j: (0, j))
    b_spec = pl.BlockSpec((1, tn_eff), lambda i, j: (0, j))
    lse_spec = pl.BlockSpec((tm_eff, 1), lambda i, j: (i, 0))

    # --- Pass 1: per-row logsumexp over the (padded) vocab ------------------
    lse = pl.pallas_call(
        _lse_kernel,
        out_shape=jax.ShapeDtypeStruct((M_pad, 1), jnp.float32),
        grid_spec=pltpu.PrefetchScalarGridSpec(
            num_scalar_prefetch=0,
            grid=grid,
            in_specs=[x_spec, w_spec, b_spec],
            out_specs=lse_spec,
            scratch_shapes=[pltpu.VMEM((tm_eff, 1), jnp.float32),
                            pltpu.VMEM((tm_eff, 1), jnp.float32)],
        ),
        compiler_params=pltpu.CompilerParams(
            dimension_semantics=("parallel", "arbitrary"),
            vmem_limit_bytes=vmem_limit),
    )(x2, w2, b2)

    # --- Pass 2: write normalized log-probabilities --------------------------
    out = pl.pallas_call(
        _out_kernel,
        out_shape=jax.ShapeDtypeStruct((M_pad, V_pad), out_dtype),
        grid_spec=pltpu.PrefetchScalarGridSpec(
            num_scalar_prefetch=0,
            grid=grid,
            in_specs=[x_spec, w_spec, b_spec, lse_spec],
            out_specs=pl.BlockSpec((tm_eff, tn_eff), lambda i, j: (i, j)),
        ),
        compiler_params=pltpu.CompilerParams(
            dimension_semantics=("parallel", "parallel"),
            vmem_limit_bytes=vmem_limit),
    )(x2, w2, b2, lse)

    return out[:M, :vocab].reshape(batch, seq, vocab)


if __name__ == "__main__":
    # Small shapes consistent with the module: (batch, seq, d_model) -> vocab.
    batch, seq, d_model, vocab_size = 2, 8, 32, 128

    key = jax.random.PRNGKey(0)
    kx, kw, kb = jax.random.split(key, 3)
    x = jax.random.normal(kx, (batch, seq, d_model), dtype=jnp.float32)
    # Deterministic synthetic parameters (shapes match nn.Linear(d_model, vocab)).
    w = jax.random.normal(kw, (d_model, vocab_size), dtype=jnp.float32) * 0.05
    b = jax.random.normal(kb, (vocab_size,), dtype=jnp.float32) * 0.05

    out = projection_layer(x, w, b)
    out = jax.block_until_ready(out)
    assert out.shape == (batch, seq, vocab_size)
    assert bool(jnp.all(jnp.isfinite(out)))

    # Reference with the same bf16 input rounding (tight check).
    xb = x.astype(jnp.bfloat16).astype(jnp.float32)
    wb = w.astype(jnp.bfloat16).astype(jnp.float32)
    ref_bf16 = jax.nn.log_softmax(xb @ wb + b, axis=-1)
    assert jnp.allclose(out, ref_bf16, atol=1e-4, rtol=1e-4)

    # Full-precision reference (loose check: only bf16 input rounding differs).
    ref_f32 = jax.nn.log_softmax(x @ w + b, axis=-1)
    assert jnp.allclose(out, ref_f32, atol=3e-2, rtol=3e-2)

    print("KERNEL_OK")
</pallas_src>

<mosaic_0001>
module attributes {stable_mosaic.version = 11 : i64} {
  func.func @_lse_kernel(%arg0: i32, %arg1: i32, %arg2: memref<16x32xbf16, #tpu.memory_space<vmem>>, %arg3: memref<32x128xbf16, #tpu.memory_space<vmem>>, %arg4: memref<1x128xf32, #tpu.memory_space<vmem>>, %arg5: memref<16x1xf32, #tpu.memory_space<vmem>>, %arg6: memref<16x1xf32, #tpu.memory_space<vmem>>, %arg7: memref<16x1xf32, #tpu.memory_space<vmem>>) attributes {dimension_semantics = [#tpu.dimension_semantics<parallel>, #tpu.dimension_semantics<arbitrary>], iteration_bounds = array<i64: 1, 1>, scalar_prefetch = 0 : i64, scratch_operands = 2 : i64, tpu.core_type = #tpu.core_type<tc>, window_params = [{transform_indices = @transform_0, window_bounds = array<i64: 16, 32>}, {transform_indices = @transform_1, window_bounds = array<i64: 32, 128>}, {transform_indices = @transform_2, window_bounds = array<i64: 1, 128>}, {transform_indices = @transform_3, window_bounds = array<i64: 16, 1>}]} {
    %c0_i32 = arith.constant 0 : i32
    %0 = arith.cmpi eq, %arg1, %c0_i32 : i32
    %1 = arith.extui %0 : i1 to i32
    %c0_i32_0 = arith.constant 0 : i32
    %2 = arith.cmpi ne, %1, %c0_i32_0 : i32
    scf.if %2 {
      %cst_18 = arith.constant -1.000000e+30 : f32
      %28 = vector.broadcast %cst_18 : f32 to vector<16x1xf32>
      %c0_19 = arith.constant 0 : index
      %c0_20 = arith.constant 0 : index
      %29 = vector.load %arg6[%c0_19, %c0_20] : memref<16x1xf32, #tpu.memory_space<vmem>>, vector<16x1xf32>
      tpu.vector_store %arg6[%c0_19, %c0_20], %28 {strides = array<i32>} : memref<16x1xf32, #tpu.memory_space<vmem>>, vector<16x1xf32>,
      %cst_21 = arith.constant 0.000000e+00 : f32
      %30 = vector.broadcast %cst_21 : f32 to vector<16x1xf32>
      %c0_22 = arith.constant 0 : index
      %c0_23 = arith.constant 0 : index
      %31 = vector.load %arg7[%c0_22, %c0_23] : memref<16x1xf32, #tpu.memory_space<vmem>>, vector<16x1xf32>
      tpu.vector_store %arg7[%c0_22, %c0_23], %30 {strides = array<i32>} : memref<16x1xf32, #tpu.memory_space<vmem>>, vector<16x1xf32>,
    } else {
    }
    %c0 = arith.constant 0 : index
    %c0_1 = arith.constant 0 : index
    %3 = vector.load %arg2[%c0, %c0_1] : memref<16x32xbf16, #tpu.memory_space<vmem>>, vector<16x32xbf16>
    %c0_2 = arith.constant 0 : index
    %c0_3 = arith.constant 0 : index
    %4 = vector.load %arg3[%c0_2, %c0_3] : memref<32x128xbf16, #tpu.memory_space<vmem>>, vector<32x128xbf16>
    %cst = arith.constant dense<0.000000e+00> : vector<16x128xf32>
    %5 = tpu.matmul %3, %4, %cst {dimension_numbers = #tpu.dot_dimension_numbers<[1], [0], [0], [1], [0, 0, 1, 1], [], []>} : vector<16x32xbf16>, vector<32x128xbf16>, vector<16x128xf32> -> vector<16x128xf32>
    %c0_4 = arith.constant 0 : index
    %c0_5 = arith.constant 0 : index
    %6 = vector.load %arg4[%c0_4, %c0_5] : memref<1x128xf32, #tpu.memory_space<vmem>>, vector<1x128xf32>
    %7 = vector.broadcast %6 : vector<1x128xf32> to vector<16x128xf32>
    %8 = arith.addf %5, %7 : vector<16x128xf32>
    %c0_6 = arith.constant 0 : index
    %c0_7 = arith.constant 0 : index
    %9 = vector.load %arg6[%c0_6, %c0_7] : memref<16x1xf32, #tpu.memory_space<vmem>>, vector<16x1xf32>
    %cst_8 = arith.constant dense<0xFF800000> : vector<16xf32>
    %10 = vector.multi_reduction <maximumf>, %8, %cst_8 [1] : vector<16x128xf32> to vector<16xf32>
    %11 = vector.shape_cast %10 : vector<16xf32> to vector<16x1xf32>
    %12 = arith.maximumf %9, %11 : vector<16x1xf32>
    %c0_9 = arith.constant 0 : index
    %c0_10 = arith.constant 0 : index
    %13 = vector.load %arg7[%c0_9, %c0_10] : memref<16x1xf32, #tpu.memory_space<vmem>>, vector<16x1xf32>
    %14 = arith.subf %9, %12 : vector<16x1xf32>
    %15 = math.exp %14 : vector<16x1xf32>
    %16 = arith.mulf %13, %15 : vector<16x1xf32>
    %17 = vector.broadcast %12 : vector<16x1xf32> to vector<16x128xf32>
    %18 = arith.subf %8, %17 : vector<16x128xf32>
    %19 = math.exp %18 : vector<16x128xf32>
    %cst_11 = arith.constant dense<0.000000e+00> : vector<16xf32>
    %20 = vector.multi_reduction <add>, %19, %cst_11 [1] : vector<16x128xf32> to vector<16xf32>
    %21 = vector.shape_cast %20 : vector<16xf32> to vector<16x1xf32>
    %22 = arith.addf %16, %21 : vector<16x1xf32>
    %c0_12 = arith.constant 0 : index
    %c0_13 = arith.constant 0 : index
    %23 = vector.load %arg7[%c0_12, %c0_13] : memref<16x1xf32, #tpu.memory_space<vmem>>, vector<16x1xf32>
    tpu.vector_store %arg7[%c0_12, %c0_13], %22 {strides = array<i32>} : memref<16x1xf32, #tpu.memory_space<vmem>>, vector<16x1xf32>,
    %c0_14 = arith.constant 0 : index
    %c0_15 = arith.constant 0 : index
    %24 = vector.load %arg6[%c0_14, %c0_15] : memref<16x1xf32, #tpu.memory_space<vmem>>, vector<16x1xf32>
    tpu.vector_store %arg6[%c0_14, %c0_15], %12 {strides = array<i32>} : memref<16x1xf32, #tpu.memory_space<vmem>>, vector<16x1xf32>,
    %c0_i32_16 = arith.constant 0 : i32
    %25 = arith.cmpi eq, %arg1, %c0_i32_16 : i32
    %26 = arith.extui %25 : i1 to i32
    %c0_i32_17 = arith.constant 0 : i32
    %27 = arith.cmpi ne, %26, %c0_i32_17 : i32
    scf.if %27 {
      %c0_18 = arith.constant 0 : index
      %c0_19 = arith.constant 0 : index
      %28 = vector.load %arg6[%c0_18, %c0_19] : memref<16x1xf32, #tpu.memory_space<vmem>>, vector<16x1xf32>
      %c0_20 = arith.constant 0 : index
      %c0_21 = arith.constant 0 : index
      %29 = vector.load %arg7[%c0_20, %c0_21] : memref<16x1xf32, #tpu.memory_space<vmem>>, vector<16x1xf32>
      %30 = math.log %29 : vector<16x1xf32>
      %31 = arith.addf %28, %30 : vector<16x1xf32>
      %c0_22 = arith.constant 0 : index
      %c0_23 = arith.constant 0 : index
      %32 = vector.load %arg5[%c0_22, %c0_23] : memref<16x1xf32, #tpu.memory_space<vmem>>, vector<16x1xf32>
      tpu.vector_store %arg5[%c0_22, %c0_23], %31 {strides = array<i32>} : memref<16x1xf32, #tpu.memory_space<vmem>>, vector<16x1xf32>,
    } else {
    }
    return
  }
  func.func @transform_0(%arg0: i32, %arg1: i32) -> (i32, i32) {
    %c0_i32 = arith.constant 0 : i32
    %c0_i32_0 = arith.constant 0 : i32
    return %arg0, %c0_i32 : i32, i32
  }
  func.func @transform_1(%arg0: i32, %arg1: i32) -> (i32, i32) {
    %c0_i32 = arith.constant 0 : i32
    %c0_i32_0 = arith.constant 0 : i32
    return %c0_i32, %arg1 : i32, i32
  }
  func.func @transform_2(%arg0: i32, %arg1: i32) -> (i32, i32) {
    %c0_i32 = arith.constant 0 : i32
    %c0_i32_0 = arith.constant 0 : i32
    return %c0_i32, %arg1 : i32, i32
  }
  func.func @transform_3(%arg0: i32, %arg1: i32) -> (i32, i32) {
    %c0_i32 = arith.constant 0 : i32
    %c0_i32_0 = arith.constant 0 : i32
    return %arg0, %c0_i32 : i32, i32
  }
}

</mosaic_0001>

<bundles_post_ra>
// kernel: tpu_custom_call.1
= control target key start
LH: loop header
LB: loop body
LE: loop exit
PB: predicated region body
PF: predicated region fallthrough
CT: control target
= control target key end

     0   :  { %8 = vsyncpa [#allocation5], 0  ;;  %s353_s0 = inlined_call_operand.hbm [shape: bf16[16,32], index: 0, kind: input, shape index: {}]   ;;  %s354_s1 = inlined_call_operand.hbm [shape: bf16[32,128], index: 1, kind: input, shape index: {}]   ;;  %s355_s2 = inlined_call_operand.vmem [shape: f32[1,128], index: 2, kind: input, shape index: {}]   ;;  %s356_s3 = inlined_call_operand.vmem [shape: f32[16,1], index: 3, kind: output, shape index: {}]  }
   0x1   :  { %9 = vsyncpa [#allocation7], 0  ;;  %s282_s12 = smov [#allocation4]   ;;  %s234_s16 = scalar_lea.hbm %s353_s0, 128 }
   0x2   :  { %s15_s13 = sshll.u32 %s282_s12, 4  ;;  %p235_p0 = scmp.ne.s32.totalorder %s353_s0, %s234_s16  ;;  %s16_s13 = int_to_ptr.vmem [resolvable:$true] %s15_s13 }
   0x3   :  { %p238_p1 = scmp.lt.u32.totalorder %s234_s16, %s353_s0 }
   0x5   :  { %p240_p2 = pnand %p238_p1, %p235_p0 }
   0x7   :  { %243 = shalt.err (!%p240_p2)
}
   0x8   :  { %s244_s21 = scalar_lea.vmem %s16_s13, 128  ;;  %p249_p4 = scmp.lt.s32.totalorder %s16_s13, %s16_s13 }
   0x9   :  { %p245_p3 = scmp.ne.s32.totalorder %s16_s13, %s244_s21  ;;  %p250_p5 = scmp.lt.s32.totalorder %s244_s21, %s244_s21 }
   0xb   :  { %p251_p6 = por %p250_p5, %p249_p4 }
   0xd   :  { %p252_p7 = pnand %p251_p6, %p245_p3 }
   0xf   :  { %255 = shalt.err (!%p252_p7)
}
  0x10   :  { %s283_s22 = smov 64   ;;  %s284_s23 = smov 4  }
  0x11   :  { %21 = dma.hbm_to_vmem [thread:$0]  %s353_s0, 128, %s16_s13, [#allocation5], %s283_s22, %s283_s22, %s284_s23  }
  0x12   :  { %s285_s26 = smov [#allocation6]   ;;  %s256_s30 = scalar_lea.hbm %s354_s1, 256 }
  0x13   :  { %s27_s27 = sshll.u32 %s285_s26, 4  ;;  %p257_p8 = scmp.ne.s32.totalorder %s354_s1, %s256_s30  ;;  %s28_s27 = int_to_ptr.vmem [resolvable:$true] %s27_s27 }
  0x14   :  { %p260_p9 = scmp.lt.u32.totalorder %s256_s30, %s354_s1 }
  0x16   :  { %p262_p10 = pnand %p260_p9, %p257_p8 }
  0x18   :  { %265 = shalt.err (!%p262_p10)
}
  0x19   :  { %s266_s8 = scalar_lea.vmem %s28_s27, 256  ;;  %p271_p12 = scmp.lt.s32.totalorder %s28_s27, %s28_s27 }
  0x1a   :  { %p267_p11 = scmp.ne.s32.totalorder %s28_s27, %s266_s8  ;;  %p272_p13 = scmp.lt.s32.totalorder %s266_s8, %s266_s8 }
  0x1c   :  { %p273_p0 = por %p272_p13, %p271_p12 }
  0x1e   :  { %p274_p1 = pnand %p273_p0, %p267_p11 }
  0x20   :  { %277 = shalt.err (!%p274_p1)
}
  0x21   :  { %33 = dma.hbm_to_vmem [thread:$0]  %s354_s1, 256, %s28_s27, [#allocation7], %s283_s22, %s283_s22, %s284_s23  }
  0x22   :  { %278 = dma.done.wait [#allocation5], 128  }
  0x23   :  { %279 = vsyncadd [#allocation5], 4294967168 }
  0x24   :  { %280 = dma.done.wait [#allocation7], 256  }
  0x25   :  { %281 = vsyncadd [#allocation7], 4294967040  ;;  %vm47_vm0 = vcmask 7168   ;;  %v286_v0 = vmov 0.0   ;;  %vm287_vm1 = vmmov 0   ;;  %v219_v1 = vld [vmem:[#allocation6] sm:$0xff]  }
  0x26   :  { %50 = vst.msk [vmem:[#allocation3] sm:$0xff] %vm47_vm0, %v286_v0  ;;  %51 = vst.msk [vmem:[#allocation3 + $0x8] sm:$0xff] %vm47_vm0, %v286_v0  ;;  %201 = vmatprep.subr.bf16.mxu0 %v286_v0  ;;  %205 = vmatprep.mubr.msk.bf16.mxu0 %vm287_vm1, %v286_v0  ;;  %v220_v2 = vld [vmem:[#allocation6 + $0x8] sm:$0xff]   ;;  %v221_v3 = vld [vmem:[#allocation4] sm:$0xff]   ;;  %vm82_vm2 = vcmask 261120   ;;  %v289_v12 = vmov 0  }
  0x27   :  { %202 = vmatpush3.bf16.msra.mxu0 %v219_v1  ;;  %v288_v4 = vmov -1e+30   ;;  %v193_v5 = vld [vmem:[%s355_s2] ss:$0 sm:$0xff]  ;;  %217 = vset.pattern.permute.xlu1 %v289_v12 }
  0x28   :  { %203 = vmatprep.subr.bf16.mxu0 %v286_v0  ;;  %48 = vst.msk [vmem:[#allocation2] sm:$0xff] %vm47_vm0, %v288_v4  ;;  %49 = vst.msk [vmem:[#allocation2 + $0x8] sm:$0xff] %vm47_vm0, %v288_v4  ;;  %218 = vset.pattern.permute.xlu0 %v289_v12 }
  0x2b   :  { %204 = vmatpush3.bf16.msra.mxu0 %v220_v2 }
  0x2d   :  { %v135_v32 = vld [vmem:[#allocation3] sm:$0xff]  ;;  %v136_v36 = vld [vmem:[#allocation3 + $0x8] sm:$0xff] }
  0x2e   :  { %206 = vmatmul.mubr.msk.bf16.vlgmr.msra.gmra.mrb[0].mxu0 %vm82_vm2, %v221_v3 }
  0x2f   :  { %v127_v13 = vld [vmem:[#allocation2] sm:$0xff]  ;;  %v128_v16 = vld [vmem:[#allocation2 + $0x8] sm:$0xff] }
 0x101   :  { %v120_v6 = vpop.f32.mrb[0].mxu0 }
 0x102   :  { %v121_v7 = vadd.f32 %v193_v5, %v120_v6  ;;  %v207_v8 = vpop.f32.mrb[1].mxu0 }
 0x103   :  { %v123_v9 = vpop.f32.mrb[2].mxu0 }
 0x104   :  { %129 = vmax.xlane.f32.xlu0 %v121_v7  ;;  %v208_v10 = vpop.f32.mrb[3].mxu0  ;;  %v124_v11 = vadd.f32 %v193_v5, %v123_v9 }
 0x108   :  { %131 = vmax.xlane.f32.xlu0 %v124_v11 }
 0x191   :  { %v130_v14 = vpop.xlane.xlu0 %129 }
 0x192   :  { %v133_v15 = vmax.f32 %v127_v13, %v130_v14 }
 0x194   :  { %v137_v17 = vsub.f32 %v127_v13, %v133_v15  ;;  %170 = vst.msk [vmem:[#allocation2] sm:$0xff] %vm47_vm0, %v133_v15  ;;  %147 = vperm.xlu1 %217, %v133_v15  }
 0x195   :  { %v132_v18 = vpop.xlane.xlu0 %131 }
 0x196   :  { %v134_v19 = vmax.f32 %v128_v16, %v132_v18  ;;  %v139_v29 = vmul.f32 1.442695, %v137_v17 }
 0x198   :  { %v138_v20 = vsub.f32 %v128_v16, %v134_v19  ;;  %171 = vst.msk [vmem:[#allocation2 + $0x8] sm:$0xff] %vm47_vm0, %v134_v19  ;;  %152 = vperm.xlu1 %217, %v134_v19  }
 0x19a   :  { %v141_v30 = vmul.f32 1.442695, %v138_v20 }
 0x19b   :  { %v175_v45 = vld [vmem:[#allocation2] sm:$0xff] }
 0x19f   :  { %v176_v49 = vld [vmem:[#allocation2 + $0x8] sm:$0xff] }
 0x213   :  { %v148_v21 = vpop.permute.xlu1 %147 }
 0x214   :  { %v155_v22 = vsub.f32 %v121_v7, %v148_v21 }
 0x216   :  { %v157_v23 = vmul.f32 1.442695, %v155_v22 }
 0x217   :  { %v153_v24 = vpop.permute.xlu1 %152 }
 0x218   :  { %222 = vpow2.f32 %v157_v23  ;;  %v156_v25 = vsub.f32 %v124_v11, %v153_v24 }
 0x21a   :  { %v159_v26 = vmul.f32 1.442695, %v156_v25 }
 0x21c   :  { %224 = vpow2.f32 %v159_v26 }
 0x21d   :  { %226 = vpow2.f32 %v139_v29 }
 0x21e   :  { %228 = vpow2.f32 %v141_v30 }
 0x222   :  { %v223_v27 = vpop.eup %222 }
 0x223   :  { %161 = vadd.xlane.f32.xlu0 %v223_v27 }
 0x226   :  { %v225_v28 = vpop.eup %224 }
 0x227   :  { %163 = vadd.xlane.f32.xlu1 %v225_v28  ;;  %v227_v31 = vpop.eup %226 }
 0x228   :  { %v143_v33 = vmul.f32 %v227_v31, %v135_v32  ;;  %v229_v34 = vpop.eup %228 }
 0x229   :  { %v144_v38 = vmul.f32 %v229_v34, %v136_v36 }
 0x2b0   :  { %v162_v35 = vpop.xlane.xlu0 %161 }
 0x2b1   :  { %v165_v37 = vadd.f32 %v162_v35, %v143_v33 }
 0x2b3   :  { %168 = vst.msk [vmem:[#allocation3] sm:$0xff] %vm47_vm0, %v165_v37 }
 0x2b4   :  { %v164_v39 = vpop.xlane.xlu1 %163 }
 0x2b5   :  { %v166_v40 = vadd.f32 %v164_v39, %v144_v38 }
 0x2b7   :  { %169 = vst.msk [vmem:[#allocation3 + $0x8] sm:$0xff] %vm47_vm0, %v166_v40 }
 0x2ba   :  { %v177_v41 = vld [vmem:[#allocation3] sm:$0xff] }
 0x2bb   :  { %230 = vlog2.f32 %v177_v41 }
 0x2be   :  { %v178_v42 = vld [vmem:[#allocation3 + $0x8] sm:$0xff] }
 0x2bf   :  { %232 = vlog2.f32 %v178_v42 }
 0x2c5   :  { %v231_v43 = vpop.eup %230 }
 0x2c6   :  { %v180_v44 = vmul.f32 0.6931472, %v231_v43 }
 0x2c8   :  { %v183_v46 = vadd.f32 %v180_v44, %v175_v45 }
 0x2c9   :  { %v233_v47 = vpop.eup %232 }
 0x2ca   :  { %185 = vst.msk [vmem:[%s356_s3] sm:$0xff] %vm47_vm0, %v183_v46  ;;  %v182_v48 = vmul.f32 0.6931472, %v233_v47 }
 0x2cc   :  { %v184_v50 = vadd.f32 %v182_v48, %v176_v49 }
 0x2ce   :  { %186 = vst.msk [vmem:[%s356_s3 + $0x8] sm:$0xff] %vm47_vm0, %v184_v50 }
 0x2cf   :  { %191 = vsyncpa [#allocation5], 1 }
 0x2d0   :  { %192 = vsyncpa [#allocation7], 1 }

</bundles_post_ra>
